<compile_context>
chip_gen: v6e
topology: v6e:2x2x1
jax: 0.10.0
libtpu: 0.0.40
codegen_flags: <defaults>
</compile_context>

<pallas_src>
import functools

import jax
import jax.numpy as jnp
from jax.experimental import pallas as pl
from jax.experimental.pallas import tpu as pltpu

_MIB = 1024 * 1024


# ----------------------------------------------------------------------------
# Generation-aware tiling defaults
# ----------------------------------------------------------------------------
def _tpu_vmem_bytes():
    """Physical VMEM capacity; falls back to the conservative v7x 64 MiB."""
    try:
        info = pltpu.get_tpu_info()
        v = getattr(info, "vmem_capacity_bytes", None)
        if v:
            return int(v)
    except Exception:
        pass
    return 64 * _MIB


def _default_tiling():
    """(tile_m, tile_h, vmem_limit_bytes) for the current TPU generation."""
    vmem = _tpu_vmem_bytes()
    if vmem >= 100 * _MIB:
        # v5e / v6e: 128 MiB VMEM -> large token + hidden tiles (fewer reduction
        # steps, weight streaming well above the HBM/MXU ridge).
        return 1024, 512, 96 * _MIB
    # v7x: 64 MiB VMEM -> keep the double-buffered working set under ~48 MiB.
    return 512, 256, 48 * _MIB


def _pick_tile_h(H, desired):
    """Largest lane-aligned hidden tile that divides the hidden dim."""
    for align in (128, 8):
        cands = [t for t in range(min(desired, H), 0, -1)
                 if H % t == 0 and t % align == 0]
        if cands:
            return cands[0]
    return H


def _pick_tile_m(M, desired):
    """Token tile: divides M, multiple of 16 (bf16 sublane packing) when possible,
    and prefers >=2 token blocks so the 'parallel' axis feeds both v7x TensorCores."""
    for align in (16, 8):
        cands = [t for t in range(min(desired, M), 0, -1)
                 if M % t == 0 and t % align == 0]
        if cands:
            for t in cands:
                if M // t >= 2 and t >= max(128, desired // 2):
                    return t
            return cands[0]
    raise ValueError(f"token count {M} must be a multiple of 8 (pad batch*seq)")


# ----------------------------------------------------------------------------
# Kernel
# ----------------------------------------------------------------------------
def _swiglu_ffn_kernel(x_ref, w13_ref, w2_ref, o_ref, acc_ref):
    """Grid = (token tiles [parallel], hidden tiles [reduction, innermost]).

    x_ref   : (tm, D)          token tile, resident across the hidden loop
    w13_ref : (D, 2*th) bf16   fused [W1^T tile | W3^T tile] for this hidden block
    w2_ref  : (th, D)  bf16    W2^T tile
    o_ref   : (tm, D)          output tile (narrow dtype), written on last step only
    acc_ref : (tm, D) f32      VMEM accumulator scratch
    """
    h = pl.program_id(1)

    # Cast activations to the weight dtype in VMEM (no wrapper-side HBM convert pass).
    x = x_ref[...].astype(w13_ref.dtype)

    # One fused MXU matmul for gate + value projections.
    gv = jnp.dot(x, w13_ref[...], preferred_element_type=jnp.float32)  # (tm, 2*th)
    th = gv.shape[-1] // 2
    g = gv[:, :th]
    v = gv[:, th:]
    h_act = (g * jax.nn.sigmoid(g) * v).astype(w2_ref.dtype)  # SiLU(g) * v

    partial = jnp.dot(h_act, w2_ref[...], preferred_element_type=jnp.float32)

    @pl.when(h == 0)
    def _():
        acc_ref[...] = partial                      # no zero-fill pass

    @pl.when(h > 0)
    def _():
        acc_ref[...] += partial

    @pl.when(h == pl.num_programs(1) - 1)
    def _():
        o_ref[...] = acc_ref[...].astype(o_ref.dtype)


# ----------------------------------------------------------------------------
# Weight pre-layout (one-time, NOT per forward step)
# ----------------------------------------------------------------------------
def prepare_weights(w1, w2, w3, *, tile_h=None, dtype=jnp.bfloat16):
    """w1, w3: (H, D) nn.Linear layout; w2: (D, H).

    Returns (w13, w2t, tile_h):
      w13   : (D, 2*H) where every tile_h-wide hidden block holds
              [W1^T tile | W3^T tile] contiguously along the lane axis.
      w2t   : (H, D)
      tile_h: packing granularity -- pass this same value to feed_forward.
    """
    H, D = w1.shape
    if tile_h is None:
        tile_h = _pick_tile_h(H, _default_tiling()[1])
    assert H % tile_h == 0, "hidden_dim must be a multiple of tile_h"
    nh = H // tile_h
    w1t = w1.T.reshape(D, nh, tile_h)
    w3t = w3.T.reshape(D, nh, tile_h)
    w13 = jnp.stack([w1t, w3t], axis=2).reshape(D, 2 * H)
    return w13.astype(dtype), w2.T.astype(dtype), tile_h


# ----------------------------------------------------------------------------
# Forward wrapper
# ----------------------------------------------------------------------------
@functools.partial(
    jax.jit, static_argnames=("tm", "tile_h", "vmem_limit_bytes", "out_dtype"))
def _feed_forward_impl(x2d, w13, w2t, *, tm, tile_h, vmem_limit_bytes, out_dtype):
    M, D = x2d.shape
    H = w2t.shape[0]
    grid = (M // tm, H // tile_h)  # (parallel token tiles, hidden reduction last)

    return pl.pallas_call(
        _swiglu_ffn_kernel,
        out_shape=jax.ShapeDtypeStruct((M, D), out_dtype),
        grid_spec=pltpu.PrefetchScalarGridSpec(
            num_scalar_prefetch=0,
            grid=grid,
            in_specs=[
                pl.BlockSpec((tm, D), lambda i, h: (i, 0)),          # x token tile
                pl.BlockSpec((D, 2 * tile_h), lambda i, h: (0, h)),  # fused W1/W3 tile
                pl.BlockSpec((tile_h, D), lambda i, h: (h, 0)),      # W2^T tile
            ],
            out_specs=pl.BlockSpec((tm, D), lambda i, h: (i, 0)),
            scratch_shapes=[pltpu.VMEM((tm, D), jnp.float32)],       # f32 accumulator
        ),
        compiler_params=pltpu.CompilerParams(
            dimension_semantics=("parallel", "arbitrary"),
            vmem_limit_bytes=vmem_limit_bytes,
        ),
    )(x2d, w13, w2t)


def feed_forward(x, w13, w2t, *, tile_h, tile_m=None, vmem_limit_bytes=None,
                 out_dtype=None):
    """x: (B, S, D) f32 or bf16; w13: (D, 2H) packed at granularity tile_h; w2t: (H, D)."""
    B, S, D = x.shape
    H = w2t.shape[0]
    assert w13.shape == (D, 2 * H)
    assert H % tile_h == 0, "tile_h must match the prepare_weights packing"

    default_tm, _, default_vmem = _default_tiling()
    if tile_m is None:
        tile_m = default_tm
    if vmem_limit_bytes is None:
        vmem_limit_bytes = default_vmem
    if out_dtype is None:
        out_dtype = x.dtype  # bf16 in -> bf16 out: no wrapper-side convert pass

    M = B * S
    tm = _pick_tile_m(M, tile_m)

    x2d = x.reshape(M, D)  # no dtype cast here; the kernel casts in VMEM
    out2d = _feed_forward_impl(
        x2d, w13, w2t,
        tm=tm, tile_h=tile_h,
        vmem_limit_bytes=int(vmem_limit_bytes),
        out_dtype=jnp.dtype(out_dtype))
    return out2d.reshape(B, S, D)


def _llama_hidden_dim(dim, multiple_of=256, ffn_dim_multiplier=None):
    hidden_dim = 4 * dim
    hidden_dim = int(2 * hidden_dim / 3)
    if ffn_dim_multiplier is not None:
        hidden_dim = int(ffn_dim_multiplier * hidden_dim)
    return multiple_of * ((hidden_dim + multiple_of - 1) // multiple_of)


if __name__ == "__main__":
    # Small ModelArgs-consistent config: dim=256 -> hidden_dim=768 (multiple_of=256).
    dim = 256
    hidden_dim = _llama_hidden_dim(dim, multiple_of=256)  # = 768
    batch, seq = 2, 8

    key = jax.random.PRNGKey(0)
    kx, k1, k2, k3 = jax.random.split(key, 4)

    x_f32 = jax.random.normal(kx, (batch, seq, dim), dtype=jnp.float32)
    # nn.Linear weight shapes (out_features, in_features), deterministic init.
    scale1 = 1.0 / (dim ** 0.5)
    scale2 = 1.0 / (hidden_dim ** 0.5)
    w1 = jax.random.uniform(k1, (hidden_dim, dim), jnp.float32, -scale1, scale1)
    w2 = jax.random.uniform(k2, (dim, hidden_dim), jnp.float32, -scale2, scale2)
    w3 = jax.random.uniform(k3, (hidden_dim, dim), jnp.float32, -scale1, scale1)

    # One-time layout + bf16 cast; tile_h is bundled with the packed weights.
    w13, w2t, tile_h = prepare_weights(w1, w2, w3, dtype=jnp.bfloat16)

    # Activations live in bf16 (typical llama2 path); kernel emits bf16 directly.
    x = x_f32.astype(jnp.bfloat16)
    out = feed_forward(x, w13, w2t, tile_h=tile_h)
    out = jax.block_until_ready(out)

    # Pure-JAX f32 reference with the same (bf16-quantized) input.
    def ref(xr, w1r, w2r, w3r):
        hr = jax.nn.silu(xr @ w1r.T) * (xr @ w3r.T)
        return hr @ w2r.T

    expected = ref(x.astype(jnp.float32), w1, w2, w3)
    assert out.shape == (batch, seq, dim)
    assert out.dtype == jnp.bfloat16
    out_f32 = out.astype(jnp.float32)
    max_err = float(jnp.max(jnp.abs(out_f32 - expected)))
    # bf16 activations/weights/output with f32 accumulation -> loose tolerance.
    assert jnp.allclose(out_f32, expected, atol=5e-2, rtol=5e-2), (
        f"mismatch, max_err={max_err}")

    print("KERNEL_OK")
</pallas_src>

<mosaic_0001>
module attributes {stable_mosaic.version = 11 : i64} {
  func.func @_swiglu_ffn_kernel(%arg0: i32, %arg1: i32, %arg2: memref<16x256xbf16, #tpu.memory_space<vmem>>, %arg3: memref<256x512xbf16, #tpu.memory_space<vmem>>, %arg4: memref<256x256xbf16, #tpu.memory_space<vmem>>, %arg5: memref<16x256xbf16, #tpu.memory_space<vmem>>, %arg6: memref<16x256xf32, #tpu.memory_space<vmem>>) attributes {dimension_semantics = [#tpu.dimension_semantics<parallel>, #tpu.dimension_semantics<arbitrary>], iteration_bounds = array<i64: 1, 3>, scalar_prefetch = 0 : i64, scratch_operands = 1 : i64, tpu.core_type = #tpu.core_type<tc>, window_params = [{transform_indices = @transform_0, window_bounds = array<i64: 16, 256>}, {transform_indices = @transform_1, window_bounds = array<i64: 256, 512>}, {transform_indices = @transform_2, window_bounds = array<i64: 256, 256>}, {transform_indices = @transform_3, window_bounds = array<i64: 16, 256>}]} {
    %c0 = arith.constant 0 : index
    %c0_0 = arith.constant 0 : index
    %0 = vector.load %arg2[%c0, %c0_0] : memref<16x256xbf16, #tpu.memory_space<vmem>>, vector<16x256xbf16>
    %c0_1 = arith.constant 0 : index
    %c0_2 = arith.constant 0 : index
    %1 = vector.load %arg3[%c0_1, %c0_2] : memref<256x512xbf16, #tpu.memory_space<vmem>>, vector<256x512xbf16>
    %cst = arith.constant dense<0.000000e+00> : vector<16x512xf32>
    %2 = tpu.matmul %0, %1, %cst {dimension_numbers = #tpu.dot_dimension_numbers<[1], [0], [0], [1], [0, 0, 1, 1], [], []>} : vector<16x256xbf16>, vector<256x512xbf16>, vector<16x512xf32> -> vector<16x512xf32>
    %3 = vector.extract_strided_slice %2 {offsets = [0, 0], sizes = [16, 256], strides = [1, 1]} : vector<16x512xf32> to vector<16x256xf32>
    %4 = vector.extract_strided_slice %2 {offsets = [0, 256], sizes = [16, 256], strides = [1, 1]} : vector<16x512xf32> to vector<16x256xf32>
    %5 = arith.negf %3 : vector<16x256xf32>
    %6 = math.exp %5 : vector<16x256xf32>
    %cst_3 = arith.constant 1.000000e+00 : f32
    %7 = vector.broadcast %cst_3 : f32 to vector<16x256xf32>
    %8 = arith.addf %7, %6 : vector<16x256xf32>
    %9 = arith.divf %7, %8 : vector<16x256xf32>
    %10 = arith.mulf %3, %9 : vector<16x256xf32>
    %11 = arith.mulf %10, %4 : vector<16x256xf32>
    %12 = arith.truncf %11 : vector<16x256xf32> to vector<16x256xbf16>
    %c0_4 = arith.constant 0 : index
    %c0_5 = arith.constant 0 : index
    %13 = vector.load %arg4[%c0_4, %c0_5] : memref<256x256xbf16, #tpu.memory_space<vmem>>, vector<256x256xbf16>
    %cst_6 = arith.constant dense<0.000000e+00> : vector<16x256xf32>
    %14 = tpu.matmul %12, %13, %cst_6 {dimension_numbers = #tpu.dot_dimension_numbers<[1], [0], [0], [1], [0, 0, 1, 1], [], []>} : vector<16x256xbf16>, vector<256x256xbf16>, vector<16x256xf32> -> vector<16x256xf32>
    %c0_i32 = arith.constant 0 : i32
    %15 = arith.cmpi eq, %arg1, %c0_i32 : i32
    %16 = arith.extui %15 : i1 to i32
    %c0_i32_7 = arith.constant 0 : i32
    %17 = arith.cmpi ne, %16, %c0_i32_7 : i32
    scf.if %17 {
      %c0_11 = arith.constant 0 : index
      %c0_12 = arith.constant 0 : index
      %24 = vector.load %arg6[%c0_11, %c0_12] : memref<16x256xf32, #tpu.memory_space<vmem>>, vector<16x256xf32>
      tpu.vector_store %arg6[%c0_11, %c0_12], %14 {strides = array<i32>} : memref<16x256xf32, #tpu.memory_space<vmem>>, vector<16x256xf32>,
    } else {
    }
    %c0_i32_8 = arith.constant 0 : i32
    %18 = arith.cmpi sgt, %arg1, %c0_i32_8 : i32
    %19 = arith.extui %18 : i1 to i32
    %c0_i32_9 = arith.constant 0 : i32
    %20 = arith.cmpi ne, %19, %c0_i32_9 : i32
    scf.if %20 {
      %c0_11 = arith.constant 0 : index
      %c0_12 = arith.constant 0 : index
      %24 = vector.load %arg6[%c0_11, %c0_12] : memref<16x256xf32, #tpu.memory_space<vmem>>, vector<16x256xf32>
      %25 = arith.addf %24, %14 : vector<16x256xf32>
      %c0_13 = arith.constant 0 : index
      %c0_14 = arith.constant 0 : index
      %26 = vector.load %arg6[%c0_13, %c0_14] : memref<16x256xf32, #tpu.memory_space<vmem>>, vector<16x256xf32>
      tpu.vector_store %arg6[%c0_13, %c0_14], %25 {strides = array<i32>} : memref<16x256xf32, #tpu.memory_space<vmem>>, vector<16x256xf32>,
    } else {
    }
    %c2_i32 = arith.constant 2 : i32
    %21 = arith.cmpi eq, %arg1, %c2_i32 : i32
    %22 = arith.extui %21 : i1 to i32
    %c0_i32_10 = arith.constant 0 : i32
    %23 = arith.cmpi ne, %22, %c0_i32_10 : i32
    scf.if %23 {
      %c0_11 = arith.constant 0 : index
      %c0_12 = arith.constant 0 : index
      %24 = vector.load %arg6[%c0_11, %c0_12] : memref<16x256xf32, #tpu.memory_space<vmem>>, vector<16x256xf32>
      %25 = arith.truncf %24 : vector<16x256xf32> to vector<16x256xbf16>
      %c0_13 = arith.constant 0 : index
      %c0_14 = arith.constant 0 : index
      %26 = vector.load %arg5[%c0_13, %c0_14] : memref<16x256xbf16, #tpu.memory_space<vmem>>, vector<16x256xbf16>
      tpu.vector_store %arg5[%c0_13, %c0_14], %25 {strides = array<i32>} : memref<16x256xbf16, #tpu.memory_space<vmem>>, vector<16x256xbf16>,
    } else {
    }
    return
  }
  func.func @transform_0(%arg0: i32, %arg1: i32) -> (i32, i32) {
    %c0_i32 = arith.constant 0 : i32
    %c0_i32_0 = arith.constant 0 : i32
    return %arg0, %c0_i32 : i32, i32
  }
  func.func @transform_1(%arg0: i32, %arg1: i32) -> (i32, i32) {
    %c0_i32 = arith.constant 0 : i32
    %c0_i32_0 = arith.constant 0 : i32
    return %c0_i32, %arg1 : i32, i32
  }
  func.func @transform_2(%arg0: i32, %arg1: i32) -> (i32, i32) {
    %c0_i32 = arith.constant 0 : i32
    %c0_i32_0 = arith.constant 0 : i32
    return %arg1, %c0_i32 : i32, i32
  }
  func.func @transform_3(%arg0: i32, %arg1: i32) -> (i32, i32) {
    %c0_i32 = arith.constant 0 : i32
    %c0_i32_0 = arith.constant 0 : i32
    return %arg0, %c0_i32 : i32, i32
  }
}

</mosaic_0001>

<bundles_post_ra>
// kernel: _feed_forward_impl.1
= control target key start
LH: loop header
LB: loop body
LE: loop exit
PB: predicated region body
PF: predicated region fallthrough
CT: control target
= control target key end

     0   :  { %8 = vsyncpa [#allocation4], 0  ;;  %s2009_s0 = inlined_call_operand.hbm [shape: bf16[16,256], index: 0, kind: input, shape index: {}]   ;;  %s2010_s1 = inlined_call_operand.hbm [shape: bf16[256,1536], index: 1, kind: input, shape index: {}]   ;;  %s2011_s2 = inlined_call_operand.hbm [shape: bf16[768,256], index: 2, kind: input, shape index: {}]   ;;  %s2012_s3 = inlined_call_operand.hbm [shape: bf16[16,256], index: 3, kind: output, shape index: {}]  }
   0x1   :  { %9 = vsyncpa [#allocation7], 0 }
   0x2   :  { %11 = vsyncpa [#allocation7 + $0x1], 0 }
   0x3   :  { %12 = vsyncpa [#allocation5], 0  ;;  %s1741_s12 = smov 0   ;;  %s1743_s13 = smov 0  }
   0x4   :  { %s1745_s14 = smov 0   ;;  %s1747_s15 = smov 0  }
   0x5   :  { %s1749_s16 = smov 0   ;;  %s1751_s17 = smov 0  }
   0x6 LB: > { %s27_s18 = sadd.s32 1, %s1704_s16  ;;  %s63_s19 = sadd.s32 1, %s1696_s14  ;;  %s1708_s17 = sphi %s1751_s17, %s18_s17   ;;  %s1704_s16 = sphi %s1749_s16, %s2021_s16   ;;  %s1700_s15 = sphi %s1747_s15, %s2020_s15   ;;  %s1696_s14 = sphi %s1745_s14, %s2019_s14   ;;  %s1692_s13 = sphi %s1743_s13, %s2018_s13   ;;  %s1688_s12 = sphi %s1741_s12, %s2017_s12  }
   0x7   : > { %p28_p0 = scmp.ge.s32.totalorder %s27_s18, 3  ;;  %p70_p1 = scmp.ne.s32.totalorder %s1696_s14, %s1692_s13 }
   0x8   : > { %p71_p2 = scmp.eq.s32.totalorder %s1708_s17, 0  ;;  %p1320_p4 = scmp.lt.s32.totalorder %s1708_s17, 3 }
   0x9   : > { %s2023_s18 = smov (%p28_p0, %s27_s18), 0  ;;  %s169_s21 = sand.u32 1, %s1708_s17  }
   0xa   : > { %p72_p3 = por %p71_p2, %p70_p1  ;;  %s60_s20 = ssub.s32 %s1704_s16, %s2023_s18 }
   0xb   : > { %p61_p5 = scmp.eq.s32.totalorder %s60_s20, 0  ;;  %s171_s22 = sand.u32 1, %s1696_s14  }
   0xc   : > { %s1291_s23 = sshll.u32 %s1704_s16, 8  ;;  %s1169_s25 = sshll.u32 %s171_s22, 9 }
   0xd   : > { %s1785_s24 = scalar_select %p61_p5, %s1696_s14, %s63_s19  }
   0xe   : > { %s179_s28 = scalar_lea.hbm %s2010_s1, %s1291_s23  ;;  %p1792_p6 = pnand %p1320_p4, %p72_p3 }
   0xf   : > { %s173_s30 = scalar_lea.vmem [#allocation6], %s1169_s25  ;;  %s1796_s5 = scalar_lea.sflag [#allocation7], %s169_s21 }
  0x10   : > { %s180_s4 = sshll.u32 %s173_s30, 4  ;;  %p1546_p7 = pneg %p1792_p6  ;;  %s181_s4 = int_to_ptr.vmem [resolvable:$true] %s180_s4 }
  0x11   : > { %s1557_s6 = scalar_lea.vmem %s181_s4, 8192  ;;  %s1710_s7 = smov [#allocation6]  }
  0x12   : > { %p1558_p8 = scmp.ne.s32.totalorder %s181_s4, %s1557_s6  ;;  %s1562_s8 = sshll.u32 %s1710_s7, 4  ;;  %s1563_s8 = int_to_ptr.vmem [resolvable:$false] %s1562_s8 }
  0x13   : > { %s1564_s9 = scalar_lea.vmem %s1563_s8, 16384  ;;  %p1565_p11 = scmp.lt.s32.totalorder %s181_s4, %s1563_s8 }
  0x14   : > { %p1560_p9 = pnand %p1558_p8, %p1546_p7  ;;  %p1566_p12 = scmp.lt.s32.totalorder %s1564_s9, %s1557_s6 }
  0x16   : > { %p1561_p10 = pneg %p1560_p9  ;;  %p1567_p13 = por %p1566_p12, %p1565_p11 }
  0x18   : > { %p1568_p0 = pnand %p1567_p13, %p1561_p10 }
  0x1a   : > { %1571 = shalt.err (!%p1568_p0)
}
  0x1b   : > { %s1711_s10 = smov 768   ;;  %s1712_s11 = smov 256  }
  0x1c   : > { %s1713_s19 = smov 16   ;;  %s1807_s20 = sadd.s32 4294967295, %s1708_s17  }
  0x1d   : > { %1315 = dma.hbm_to_vmem [thread:$0]  (!%p1792_p6), %s179_s28, 8192, %s181_s4, %s1796_s5, %s1711_s10, %s1712_s11, %s1713_s19  }
  0x1e   : > { %p76_p1 = scmp.ne.s32.totalorder %s1692_s13, %s1688_s12  ;;  %p77_p2 = scmp.eq.s32.totalorder %s1807_s20, 0 }
  0x1f   : > { %p1166_p3 = scmp.ge.s32.totalorder %s1708_s17, 1  ;;  %p139_p4 = scmp.lt.s32.totalorder %s1708_s17, 4 }
  0x20   : > { %p1816_p5 = por %p77_p2, %p76_p1  ;;  %s1714_s25 = smov [#allocation3]  }
  0x21   : > { %p1820_p8 = pnand %p1166_p3, %p139_p4  ;;  %s155_s26 = sshll.u32 %s1714_s25, 4  ;;  %s156_s26 = int_to_ptr.vmem [resolvable:$true] %s155_s26 }
  0x22   : > { %s1172_s12 = sshll.u32 %s171_s22, 8  ;;  %s1293_s27 = sshll.u32 %s1704_s16, 12 }
  0x23   : > { %p1308_p9 = pneg %p1820_p8  ;;  %s1838_s6 = scalar_lea.hbm %s2011_s2, %s1293_s27 }
  0x24   : > { %s194_s7 = scalar_lea.vmem [#allocation8], %s1172_s12  ;;  %s1583_s9 = scalar_lea.vmem %s156_s26, 256 }
  0x25   : > { %p1831_p10 = pnand %p1308_p9, %p77_p2  ;;  %s202_s8 = sshll.u32 %s194_s7, 4  ;;  %s1840_s8 = int_to_ptr.vmem [resolvable:$true] %s202_s8 }
  0x26   : > { %p1584_p12 = scmp.ne.s32.totalorder %s156_s26, %s1583_s9  ;;  %p1591_p1 = scmp.lt.s32.totalorder %s156_s26, %s156_s26 }
  0x27   : > { %p1574_p11 = pneg %p1831_p10  ;;  %p1592_p3 = scmp.lt.s32.totalorder %s1583_s9, %s1583_s9 }
  0x29   : > { %p1586_p13 = pnand %p1584_p12, %p1574_p11  ;;  %p1593_p4 = por %p1592_p3, %p1591_p1 }
  0x2b   : > { %p1587_p0 = pneg %p1586_p13 }
  0x2d   : > { %p1594_p9 = pnand %p1593_p4, %p1587_p0 }
  0x2f   : > { %1597 = shalt.err (!%p1594_p9)
}
  0x30   : > { %s1715_s22 = smov 128   ;;  %s1716_s10 = smov 8  }
  0x31   : > { %1311 = dma.hbm_to_vmem [thread:$0]  (!%p1831_p10), %s2009_s0, 256, %s156_s26, [#allocation4], %s1715_s22, %s1715_s22, %s1716_s10  }
  0x32   : > { %s1611_s25 = scalar_lea.vmem %s1840_s8, 4096  ;;  %s1717_s12 = smov [#allocation8]  }
  0x33   : > { %p1612_p11 = scmp.ne.s32.totalorder %s1840_s8, %s1611_s25  ;;  %s1616_s27 = sshll.u32 %s1717_s12, 4  ;;  %s1617_s27 = int_to_ptr.vmem [resolvable:$false] %s1616_s27 }
  0x34   : > { %s1618_s30 = scalar_lea.vmem %s1617_s27, 8192  ;;  %p1619_p0 = scmp.lt.s32.totalorder %s1840_s8, %s1617_s27 }
  0x35   : > { %p1614_p12 = pnand %p1612_p11, %p1546_p7  ;;  %p1620_p1 = scmp.lt.s32.totalorder %s1618_s30, %s1611_s25 }
  0x37   : > { %p1615_p13 = pneg %p1614_p12  ;;  %p1621_p3 = por %p1620_p1, %p1619_p0 }
  0x39   : > { %p1622_p4 = pnand %p1621_p3, %p1615_p13 }
  0x3b   : > { %1625 = shalt.err (!%p1622_p4)
}
  0x3c   : > { %1318 = dma.hbm_to_vmem [thread:$0]  (!%p1792_p6), %s1838_s6, 4096, %s1840_s8, %s1796_s5, %s1715_s22, %s1715_s22, %s1716_s10  }
  0x3d   : > { %214 = sbr.rel (%p1820_p8) target bundleno = 615 (0x267), region = 32 }
  0x42   : > { %1675 = dma.done.wait (%p77_p2), [#allocation4], 256  }
  0x43   : > { %1677 = vsyncadd (%p77_p2), [#allocation4], 4294967040  ;;  %s220_s26 = sand.u32 1, %s1807_s20   ;;  %s222_s28 = sand.u32 1, %s1692_s13  }
  0x44   : > { %s1178_s29 = sshll.u32 %s222_s28, 9  ;;  %s221_s4 = scalar_lea.sflag [#allocation7], %s220_s26 }
  0x45   : > { %s1870_s7 = scalar_lea.vmem [#allocation6], %s1178_s29 }
  0x46   : > { %1679 = dma.done.wait (%p1816_p5), %s221_s4, 12288  }
  0x47   : > { %1681 = vsyncadd (%p1816_p5), %s221_s4, 4294955008  ;;  %v1381_v0 = vld [vmem:[%s1870_s7 + $0xe4] ss:$16 sps:$4 sm:$0xff]   ;;  %v1383_v1 = vld [vmem:[%s1870_s7 + $0xe0] ss:$16 sps:$4 sm:$0xff]   ;;  %s1179_s5 = sshll.u32 %s222_s28, 8 }
  0x48   : > { %656 = vmatprep.subr.bf16.mxu0 %v1381_v0  ;;  %v1384_v2 = vld [vmem:[%s1870_s7 + $0xc4] ss:$16 sps:$4 sm:$0xff]   ;;  %v1386_v3 = vld [vmem:[%s1870_s7 + $0xc0] ss:$16 sps:$4 sm:$0xff]   ;;  %v1404_v8 = vld [vmem:[%s1870_s7 + $0xec] ss:$16 sps:$4 sm:$0xff]  }
  0x49   : > { %657 = vmatpush1.bf16.msra.mxu0 %v1383_v1  ;;  %v1387_v4 = vld [vmem:[%s1870_s7 + $0xa4] ss:$16 sps:$4 sm:$0xff]   ;;  %v1389_v5 = vld [vmem:[%s1870_s7 + $0xa0] ss:$16 sps:$4 sm:$0xff]   ;;  %v1407_v9 = vld [vmem:[%s1870_s7 + $0xe8] ss:$16 sps:$4 sm:$0xff]   ;;  %699 = vmatprep.subr.bf16.mxu1 %v1404_v8 }
  0x4a   : > { %658 = vmatprep.subr.bf16.mxu0 %v1384_v2  ;;  %v1390_v6 = vld [vmem:[%s1870_s7 + $0x84] ss:$16 sps:$4 sm:$0xff]   ;;  %v1392_v7 = vld [vmem:[%s1870_s7 + $0x80] ss:$16 sps:$4 sm:$0xff]   ;;  %v1410_v11 = vld [vmem:[%s1870_s7 + $0xcc] ss:$16 sps:$4 sm:$0xff]   ;;  %700 = vmatpush1.bf16.msra.mxu1 %v1407_v9 }
  0x4b   : > { %v1393_v10 = vld [vmem:[%s1870_s7 + $0x64] ss:$16 sps:$4 sm:$0xff]   ;;  %v1413_v12 = vld [vmem:[%s1870_s7 + $0xc8] ss:$16 sps:$4 sm:$0xff]   ;;  %v1395_v13 = vld [vmem:[%s1870_s7 + $0x60] ss:$16 sps:$4 sm:$0xff]   ;;  %701 = vmatprep.subr.bf16.mxu1 %v1410_v11 }
  0x4c   : > { %v1396_v14 = vld [vmem:[%s1870_s7 + $0x44] ss:$16 sps:$4 sm:$0xff]   ;;  %v1416_v15 = vld [vmem:[%s1870_s7 + $0xac] ss:$16 sps:$4 sm:$0xff]   ;;  %v1419_v16 = vld [vmem:[%s1870_s7 + $0xa8] ss:$16 sps:$4 sm:$0xff]  }
  0x4d   : > { %659 = vmatpush1.bf16.msra.mxu0 %v1386_v3  ;;  %v1398_v17 = vld [vmem:[%s1870_s7 + $0x40] ss:$16 sps:$4 sm:$0xff]   ;;  %v1422_v18 = vld [vmem:[%s1870_s7 + $0x8c] ss:$16 sps:$4 sm:$0xff]   ;;  %v1399_v19 = vld [vmem:[%s1870_s7 + $0x24] ss:$16 sps:$4 sm:$0xff]  }
  0x4e   : > { %660 = vmatprep.subr.bf16.mxu0 %v1387_v4  ;;  %702 = vmatpush1.bf16.msra.mxu1 %v1413_v12  ;;  %v1401_v20 = vld [vmem:[%s1870_s7 + $0x20] ss:$16 sps:$4 sm:$0xff]   ;;  %v1425_v21 = vld [vmem:[%s1870_s7 + $0x88] ss:$16 sps:$4 sm:$0xff]   ;;  %v1428_v22 = vld [vmem:[%s1870_s7 + $0x6c] ss:$16 sps:$4 sm:$0xff]  }
  0x4f   : > { %703 = vmatprep.subr.bf16.mxu1 %v1416_v15  ;;  %v1402_v23 = vld [vmem:[%s1870_s7 + $0x4] ss:$16 sps:$4 sm:$0xff]   ;;  %v1431_v24 = vld [vmem:[%s1870_s7 + $0x68] ss:$16 sps:$4 sm:$0xff]   ;;  %v1406_v25 = vld [vmem:[%s1870_s7] ss:$16 sps:$4 sm:$0xff]  }
  0x50   : > { %v1434_v26 = vld [vmem:[%s1870_s7 + $0x4c] ss:$16 sps:$4 sm:$0xff]   ;;  %v1408_v27 = vld [vmem:[%s1870_s7 + $0x1e4] ss:$16 sps:$4 sm:$0xff]   ;;  %v1412_v28 = vld [vmem:[%s1870_s7 + $0x1e0] ss:$16 sps:$4 sm:$0xff]  }
  0x51   : > { %661 = vmatpush1.bf16.msra.mxu0 %v1389_v5  ;;  %v1437_v29 = vld [vmem:[%s1870_s7 + $0x48] ss:$16 sps:$4 sm:$0xff]   ;;  %v1440_v30 = vld [vmem:[%s1870_s7 + $0x2c] ss:$16 sps:$4 sm:$0xff]   ;;  %v1414_v31 = vld [vmem:[%s1870_s7 + $0x1c4] ss:$16 sps:$4 sm:$0xff]  }
  0x52   : > { %662 = vmatprep.subr.bf16.mxu0 %v1390_v6  ;;  %704 = vmatpush1.bf16.msra.mxu1 %v1419_v16  ;;  %v1443_v32 = vld [vmem:[%s1870_s7 + $0x28] ss:$16 sps:$4 sm:$0xff]   ;;  %v1458_v33 = vld [vmem:[#allocation3 + $0x4] ss:$8 sps:$4 sm:$0xff]   ;;  %v1418_v34 = vld [vmem:[%s1870_s7 + $0x1c0] ss:$16 sps:$4 sm:$0xff]  }
  0x53   : > { %705 = vmatprep.subr.bf16.mxu1 %v1422_v18  ;;  %v1446_v35 = vld [vmem:[%s1870_s7 + $0xc] ss:$16 sps:$4 sm:$0xff]   ;;  %v1420_v36 = vld [vmem:[%s1870_s7 + $0x1a4] ss:$16 sps:$4 sm:$0xff]   ;;  %688 = vmatprep.mubr.bf16.mxu0 %v1458_v33  ;;  %v1449_v37 = vld [vmem:[%s1870_s7 + $0x8] ss:$16 sps:$4 sm:$0xff]  }
  0x54   : > { %731 = vmatprep.mubr.bf16.mxu1 %v1458_v33  ;;  %v1424_v38 = vld [vmem:[%s1870_s7 + $0x1a0] ss:$16 sps:$4 sm:$0xff]   ;;  %v1452_v39 = vld [vmem:[%s1870_s7 + $0x1ec] ss:$16 sps:$4 sm:$0xff]   ;;  %v1426_v40 = vld [vmem:[%s1870_s7 + $0x184] ss:$16 sps:$4 sm:$0xff]  }
  0x55   : > { %663 = vmatpush1.bf16.msra.mxu0 %v1392_v7  ;;  %v1455_v41 = vld [vmem:[%s1870_s7 + $0x1e8] ss:$16 sps:$4 sm:$0xff]   ;;  %v1430_v42 = vld [vmem:[%s1870_s7 + $0x180] ss:$16 sps:$4 sm:$0xff]   ;;  %v1459_v43 = vld [vmem:[%s1870_s7 + $0x1cc] ss:$16 sps:$4 sm:$0xff]  }
  0x56   : > { %664 = vmatprep.subr.bf16.mxu0 %v1393_v10  ;;  %706 = vmatpush1.bf16.msra.mxu1 %v1425_v21  ;;  %v1432_v44 = vld [vmem:[%s1870_s7 + $0x164] ss:$16 sps:$4 sm:$0xff]   ;;  %s1922_s21 = scalar_lea.vmem [#allocation8], %s1179_s5  ;;  %v1461_v45 = vld [vmem:[%s1870_s7 + $0x1c8] ss:$16 sps:$4 sm:$0xff]   ;;  %p1282_p6 = scmp.ne.s32.totalorder %s1700_s15, 0 }
  0x57   : > { %707 = vmatprep.subr.bf16.mxu1 %v1428_v22  ;;  %v1436_v46 = vld [vmem:[%s1870_s7 + $0x160] ss:$16 sps:$4 sm:$0xff]   ;;  %v1462_v47 = vld [vmem:[%s1870_s7 + $0x1ac] ss:$16 sps:$4 sm:$0xff]   ;;  %v1438_v48 = vld [vmem:[%s1870_s7 + $0x144] ss:$16 sps:$4 sm:$0xff]  }
  0x58   : > { %v1442_v49 = vld [vmem:[%s1870_s7 + $0x140] ss:$16 sps:$4 sm:$0xff]   ;;  %v1444_v50 = vld [vmem:[%s1870_s7 + $0x124] ss:$16 sps:$4 sm:$0xff]   ;;  %v1464_v51 = vld [vmem:[%s1870_s7 + $0x1a8] ss:$16 sps:$4 sm:$0xff]  }
  0x59   : > { %665 = vmatpush1.bf16.msra.mxu0 %v1395_v13  ;;  %v1465_v52 = vld [vmem:[%s1870_s7 + $0x18c] ss:$16 sps:$4 sm:$0xff]   ;;  %v1467_v53 = vld [vmem:[%s1870_s7 + $0x188] ss:$16 sps:$4 sm:$0xff]   ;;  %v1448_v54 = vld [vmem:[%s1870_s7 + $0x120] ss:$16 sps:$4 sm:$0xff]  }
  0x5a   : > { %666 = vmatprep.subr.bf16.mxu0 %v1396_v14  ;;  %708 = vmatpush1.bf16.msra.mxu1 %v1431_v24  ;;  %v1468_v55 = vld [vmem:[%s1870_s7 + $0x16c] ss:$16 sps:$4 sm:$0xff]   ;;  %v1450_v56 = vld [vmem:[%s1870_s7 + $0x104] ss:$16 sps:$4 sm:$0xff]   ;;  %v1470_v57 = vld [vmem:[%s1870_s7 + $0x168] ss:$16 sps:$4 sm:$0xff]  }
  0x5b   : > { %709 = vmatprep.subr.bf16.mxu1 %v1434_v26  ;;  %v1454_v58 = vld [vmem:[%s1870_s7 + $0x100] ss:$16 sps:$4 sm:$0xff]   ;;  %v1471_v59 = vld [vmem:[%s1870_s7 + $0x14c] ss:$16 sps:$4 sm:$0xff]   ;;  %v1473_v62 = vld [vmem:[%s1870_s7 + $0x148] ss:$16 sps:$4 sm:$0xff]  }
  0x5c   : > { %v1482_v60 = vld [vmem:[%s1922_s21 + $0x74] ss:$8 sps:$4 sm:$0xff]   ;;  %v1456_v61 = vld [vmem:[#allocation3] ss:$8 sps:$4 sm:$0xff]   ;;  %v1485_v1 = vld [vmem:[%s1922_s21 + $0x64] ss:$8 sps:$4 sm:$0xff]  }
  0x5d   : > { %667 = vmatpush1.bf16.msra.mxu0 %v1398_v17  ;;  %v1474_v63 = vld [vmem:[%s1870_s7 + $0x12c] ss:$16 sps:$4 sm:$0xff]   ;;  %v1480_v0 = vld [vmem:[%s1922_s21 + $0x70] ss:$8 sps:$4 sm:$0xff]   ;;  %v1483_v4 = vld [vmem:[%s1922_s21 + $0x60] ss:$8 sps:$4 sm:$0xff]  }
  0x5e   : > { %668 = vmatprep.subr.bf16.mxu0 %v1399_v19  ;;  %710 = vmatpush1.bf16.msra.mxu1 %v1437_v29  ;;  %v1476_v2 = vld [vmem:[%s1870_s7 + $0x128] ss:$16 sps:$4 sm:$0xff]   ;;  %v1477_v3 = vld [vmem:[%s1870_s7 + $0x10c] ss:$16 sps:$4 sm:$0xff]  }
  0x5f   : > { %711 = vmatprep.subr.bf16.mxu1 %v1440_v30  ;;  %v1488_v5 = vld [vmem:[%s1922_s21 + $0x54] ss:$8 sps:$4 sm:$0xff]   ;;  %v1479_v6 = vld [vmem:[%s1870_s7 + $0x108] ss:$16 sps:$4 sm:$0xff]   ;;  %v1491_v8 = vld [vmem:[%s1922_s21 + $0x44] ss:$8 sps:$4 sm:$0xff]  }
  0x60   : > { %v1486_v7 = vld [vmem:[%s1922_s21 + $0x50] ss:$8 sps:$4 sm:$0xff]   ;;  %v1489_v9 = vld [vmem:[%s1922_s21 + $0x40] ss:$8 sps:$4 sm:$0xff]   ;;  %v1494_v10 = vld [vmem:[%s1922_s21 + $0x34] ss:$8 sps:$4 sm:$0xff]  }
  0x61   : > { %669 = vmatpush1.bf16.msra.mxu0 %v1401_v20  ;;  %v1492_v11 = vld [vmem:[%s1922_s21 + $0x30] ss:$8 sps:$4 sm:$0xff]   ;;  %v1497_v12 = vld [vmem:[%s1922_s21 + $0x24] ss:$8 sps:$4 sm:$0xff]   ;;  %v1495_v13 = vld [vmem:[%s1922_s21 + $0x20] ss:$8 sps:$4 sm:$0xff]  }
  0x62   : > { %670 = vmatprep.subr.bf16.mxu0 %v1402_v23  ;;  %712 = vmatpush1.bf16.msra.mxu1 %v1443_v32  ;;  %v1500_v14 = vld [vmem:[%s1922_s21 + $0x14] ss:$8 sps:$4 sm:$0xff]   ;;  %v1498_v15 = vld [vmem:[%s1922_s21 + $0x10] ss:$8 sps:$4 sm:$0xff]   ;;  %v1503_v16 = vld [vmem:[%s1922_s21 + $0x4] ss:$8 sps:$4 sm:$0xff]  }
  0x63   : > { %713 = vmatprep.subr.bf16.mxu1 %v1446_v35  ;;  %v1501_v17 = vld [vmem:[%s1922_s21] ss:$8 sps:$4 sm:$0xff]   ;;  %v1506_v18 = vld [vmem:[%s1922_s21 + $0xf4] ss:$8 sps:$4 sm:$0xff]   ;;  %v1504_v19 = vld [vmem:[%s1922_s21 + $0xf0] ss:$8 sps:$4 sm:$0xff]  }
  0x64   : > { %v1509_v20 = vld [vmem:[%s1922_s21 + $0xe4] ss:$8 sps:$4 sm:$0xff]   ;;  %v1507_v21 = vld [vmem:[%s1922_s21 + $0xe0] ss:$8 sps:$4 sm:$0xff]   ;;  %v1512_v22 = vld [vmem:[%s1922_s21 + $0xd4] ss:$8 sps:$4 sm:$0xff]  }
  0x65   : > { %671 = vmatpush1.bf16.msra.mxu0 %v1406_v25  ;;  %v1510_v23 = vld [vmem:[%s1922_s21 + $0xd0] ss:$8 sps:$4 sm:$0xff]   ;;  %v1515_v24 = vld [vmem:[%s1922_s21 + $0xc4] ss:$8 sps:$4 sm:$0xff]   ;;  %v1513_v25 = vld [vmem:[%s1922_s21 + $0xc0] ss:$8 sps:$4 sm:$0xff]  }
  0x66   : > { %672 = vmatprep.subr.bf16.mxu0 %v1408_v27  ;;  %714 = vmatpush1.bf16.msra.mxu1 %v1449_v37  ;;  %v1518_v26 = vld [vmem:[%s1922_s21 + $0xb4] ss:$8 sps:$4 sm:$0xff]   ;;  %v1516_v27 = vld [vmem:[%s1922_s21 + $0xb0] ss:$8 sps:$4 sm:$0xff]   ;;  %v1519_v29 = vld [vmem:[%s1922_s21 + $0xa0] ss:$8 sps:$4 sm:$0xff]  }
  0x67   : > { %715 = vmatprep.subr.bf16.mxu1 %v1452_v39  ;;  %v1524_v30 = vld [vmem:[%s1922_s21 + $0x94] ss:$8 sps:$4 sm:$0xff]   ;;  %v1527_v32 = vld [vmem:[%s1922_s21 + $0x84] ss:$8 sps:$4 sm:$0xff]   ;;  %v1525_v33 = vld [vmem:[%s1922_s21 + $0x80] ss:$8 sps:$4 sm:$0xff]  }
  0x69   : > { %673 = vmatpush2.bf16.msra.mxu0 %v1412_v28  ;;  %v1521_v28 = vld [vmem:[%s1922_s21 + $0xa4] ss:$8 sps:$4 sm:$0xff]  }
  0x6a   : > { %674 = vmatprep.subr.bf16.mxu0 %v1414_v31  ;;  %716 = vmatpush2.bf16.msra.mxu1 %v1455_v41  ;;  %v1522_v31 = vld [vmem:[%s1922_s21 + $0x90] ss:$8 sps:$4 sm:$0xff]  }
  0x6b   : > { %717 = vmatprep.subr.bf16.mxu1 %v1459_v43 }
  0x6d   : > { %675 = vmatpush2.bf16.msra.mxu0 %v1418_v34 }
  0x6e   : > { %676 = vmatprep.subr.bf16.mxu0 %v1420_v36  ;;  %718 = vmatpush2.bf16.msra.mxu1 %v1461_v45 }
  0x6f   : > { %719 = vmatprep.subr.bf16.mxu1 %v1462_v47 }
  0x71   : > { %677 = vmatpush2.bf16.msra.mxu0 %v1424_v38 }
  0x72   : > { %678 = vmatprep.subr.bf16.mxu0 %v1426_v40  ;;  %720 = vmatpush2.bf16.msra.mxu1 %v1464_v51 }
  0x73   : > { %721 = vmatprep.subr.bf16.mxu1 %v1465_v52 }
  0x75   : > { %679 = vmatpush2.bf16.msra.mxu0 %v1430_v42 }
  0x76   : > { %680 = vmatprep.subr.bf16.mxu0 %v1432_v44  ;;  %722 = vmatpush2.bf16.msra.mxu1 %v1467_v53 }
  0x77   : > { %723 = vmatprep.subr.bf16.mxu1 %v1468_v55 }
  0x79   : > { %681 = vmatpush2.bf16.msra.mxu0 %v1436_v46 }
  0x7a   : > { %682 = vmatprep.subr.bf16.mxu0 %v1438_v48  ;;  %724 = vmatpush2.bf16.msra.mxu1 %v1470_v57 }
  0x7b   : > { %725 = vmatprep.subr.bf16.mxu1 %v1471_v59 }
  0x7d   : > { %683 = vmatpush2.bf16.msra.mxu0 %v1442_v49 }
  0x7e   : > { %684 = vmatprep.subr.bf16.mxu0 %v1444_v50  ;;  %726 = vmatpush2.bf16.msra.mxu1 %v1473_v62 }
  0x7f   : > { %727 = vmatprep.subr.bf16.mxu1 %v1474_v63 }
  0x81   : > { %685 = vmatpush2.bf16.msra.mxu0 %v1448_v54 }
  0x82   : > { %686 = vmatprep.subr.bf16.mxu0 %v1450_v56  ;;  %728 = vmatpush2.bf16.msra.mxu1 %v1476_v2 }
  0x83   : > { %729 = vmatprep.subr.bf16.mxu1 %v1477_v3 }
  0x85   : > { %687 = vmatpush2.bf16.msra.mxu0 %v1454_v58 }
  0x86   : > { %968 = vmatprep.subr.bf16.mxu0 %v1482_v60  ;;  %730 = vmatpush2.bf16.msra.mxu1 %v1479_v6 }
  0x88   : > { %689 = vmatmul.mubr.bf16.vlgmr.msra.gmra.mxu0 %v1456_v61 }
  0x89   : > { %969 = vmatpush1.bf16.msra.mxu0 %v1480_v0  ;;  %732 = vmatmul.mubr.bf16.vlgmr.msra.gmra.mxu1 %v1456_v61 }
  0x8a   : > { %970 = vmatprep.subr.bf16.mxu0 %v1485_v1 }
  0x8d   : > { %971 = vmatpush1.bf16.msra.mxu0 %v1483_v4 }
  0x8e   : > { %972 = vmatprep.subr.bf16.mxu0 %v1488_v5 }
  0x91   : > { %973 = vmatpush1.bf16.msra.mxu0 %v1486_v7 }
  0x92   : > { %974 = vmatprep.subr.bf16.mxu0 %v1491_v8 }
  0x95   : > { %975 = vmatpush1.bf16.msra.mxu0 %v1489_v9 }
  0x96   : > { %976 = vmatprep.subr.bf16.mxu0 %v1494_v10 }
  0x99   : > { %977 = vmatpush1.bf16.msra.mxu0 %v1492_v11 }
  0x9a   : > { %978 = vmatprep.subr.bf16.mxu0 %v1497_v12 }
  0x9d   : > { %979 = vmatpush1.bf16.msra.mxu0 %v1495_v13 }
  0x9e   : > { %980 = vmatprep.subr.bf16.mxu0 %v1500_v14 }
  0xa1   : > { %981 = vmatpush1.bf16.msra.mxu0 %v1498_v15 }
  0xa2   : > { %982 = vmatprep.subr.bf16.mxu0 %v1503_v16 }
  0xa5   : > { %983 = vmatpush1.bf16.msra.mxu0 %v1501_v17 }
  0xa6   : > { %984 = vmatprep.subr.bf16.mxu0 %v1506_v18 }
  0xa9   : > { %985 = vmatpush2.bf16.msra.mxu0 %v1504_v19 }
  0xaa   : > { %986 = vmatprep.subr.bf16.mxu0 %v1509_v20 }
  0xad   : > { %987 = vmatpush2.bf16.msra.mxu0 %v1507_v21 }
  0xae   : > { %988 = vmatprep.subr.bf16.mxu0 %v1512_v22 }
  0xb1   : > { %989 = vmatpush2.bf16.msra.mxu0 %v1510_v23 }
  0xb2   : > { %990 = vmatprep.subr.bf16.mxu0 %v1515_v24 }
  0xb5   : > { %991 = vmatpush2.bf16.msra.mxu0 %v1513_v25 }
  0xb6   : > { %992 = vmatprep.subr.bf16.mxu0 %v1518_v26 }
  0xb9   : > { %993 = vmatpush2.bf16.msra.mxu0 %v1516_v27 }
  0xba   : > { %994 = vmatprep.subr.bf16.mxu0 %v1521_v28 }
  0xbd   : > { %995 = vmatpush2.bf16.msra.mxu0 %v1519_v29 }
  0xbe   : > { %996 = vmatprep.subr.bf16.mxu0 %v1524_v30 }
  0xc1   : > { %997 = vmatpush2.bf16.msra.mxu0 %v1522_v31 }
  0xc2   : > { %998 = vmatprep.subr.bf16.mxu0 %v1527_v32 }
  0xc5   : > { %999 = vmatpush2.bf16.msra.mxu0 %v1525_v33 }
 0x148   : > { %v690_v34 = vpop.f32.mrf.mxu0 }
 0x149   : > { %v1246_v35 = vmul.f32 -1.442695, %v690_v34  ;;  %v733_v50 = vpop.f32.mrf.mxu1 }
 0x14a   : > { %v692_v36 = vpop.f32.mrf.mxu0 }
 0x14b   : > { %1528 = vpow2.f32 %v1246_v35  ;;  %v1247_v37 = vmul.f32 -1.442695, %v692_v36  ;;  %v735_v51 = vpop.f32.mrf.mxu1 }
 0x14c   : > { %v694_v38 = vpop.f32.mrf.mxu0 }
 0x14d   : > { %1530 = vpow2.f32 %v1247_v37  ;;  %v1248_v39 = vmul.f32 -1.442695, %v694_v38  ;;  %v737_v55 = vpop.f32.mrf.mxu1 }
 0x14e   : > { %v696_v40 = vpop.f32.mrf.mxu0 }
 0x14f   : > { %1532 = vpow2.f32 %v1248_v39  ;;  %v1249_v41 = vmul.f32 -1.442695, %v696_v40  ;;  %v739_v62 = vpop.f32.mrf.mxu1 }
 0x151   : > { %1534 = vpow2.f32 %v1249_v41 }
 0x158   : > { %v1529_v42 = vpop.eup %1528 }
 0x159   : > { %v754_v44 = vadd.f32 1.0, %v1529_v42 }
 0x15a   : > { %v1531_v43 = vpop.eup %1530 }
 0x15b   : > { %v755_v45 = vadd.f32 1.0, %v1531_v43 }
 0x15c   : > { %v1533_v46 = vpop.eup %1532 }
 0x15d   : > { %1536 = vrcp.f32 %v755_v45  ;;  %v756_v47 = vadd.f32 1.0, %v1533_v46 }
 0x15e   : > { %v1535_v48 = vpop.eup %1534  ;;  %1538 = vrcp.f32 %v754_v44 }
 0x15f   : > { %1540 = vrcp.f32 %v756_v47  ;;  %v757_v49 = vadd.f32 1.0, %v1535_v48 }
 0x161   : > { %1542 = vrcp.f32 %v757_v49 }
 0x16a   : > { %v1537_v52 = vpop.eup %1536 }
 0x16b   : > { %v1539_v53 = vpop.eup %1538  ;;  %v767_v56 = vmul.f32 %v1537_v52, %v692_v36 }
 0x16c   : > { %v1541_v54 = vpop.eup %1540  ;;  %v766_v59 = vmul.f32 %v1539_v53, %v690_v34 }
 0x16d   : > { %v768_v57 = vmul.f32 %v1541_v54, %v694_v38  ;;  %v771_v63 = vmul.f32 %v767_v56, %v735_v51 }
 0x16e   : > { %v1543_v58 = vpop.eup %1542  ;;  %v770_v1 = vmul.f32 %v766_v59, %v733_v50 }
 0x16f   : > { %v769_v60 = vmul.f32 %v1543_v58, %v696_v40  ;;  %v772_v61 = vmul.f32 %v768_v57, %v737_v55 }
 0x171   : > { %v773_v0 = vmul.f32 %v769_v60, %v739_v62  ;;  %v774_v3 = vpack.c.bf16 %v772_v61, %v770_v1 }
 0x173   : > { %v775_v2 = vpack.c.bf16 %v773_v0, %v771_v63 }
 0x175   : > { %1000 = vmatprep.mubr.bf16.mxu0 %v775_v2 }
 0x176   : > { %1001 = vmatmul.mubr.bf16.vlgmr.msra.gmra.mxu0 %v774_v3 }
 0x236   : > { %v1002_v4 = vpop.f32.mrf.mxu0 }
 0x238   : > { %v1004_v5 = vpop.f32.mrf.mxu0  ;;  %1014 = sbr.rel (%p1282_p6) target bundleno = 575 (0x23f), region = 48 }
 0x23a   : > { %v1006_v6 = vpop.f32.mrf.mxu0 }
 0x23c   : > { %v1008_v7 = vpop.f32.mrf.mxu0 }
 0x23d   : > { %1015 = vst [vmem:[#allocation2 + $0x10] sm:$0xff] %v1002_v4  ;;  %1016 = vst [vmem:[#allocation2] sm:$0xff] %v1004_v5 }
 0x23e   : > { %1017 = vst [vmem:[#allocation2 + $0x18] sm:$0xff] %v1006_v6  ;;  %1018 = vst [vmem:[#allocation2 + $0x8] sm:$0xff] %v1008_v7 }
 0x23f PF: > { %p1283_p7 = scmp.le.s32.totalorder %s1700_s15, 0 }
 0x241   : > { %1022 = sbr.rel (%p1283_p7) target bundleno = 587 (0x24b), region = 52 }
 0x246   : > { %v1023_v8 = vld [vmem:[#allocation2 + $0x10] sm:$0xff]  ;;  %v1024_v9 = vld [vmem:[#allocation2] sm:$0xff]  ;;  %v1025_v10 = vld [vmem:[#allocation2 + $0x18] sm:$0xff] }
 0x247   : > { %v1027_v11 = vadd.f32 %v1023_v8, %v1002_v4  ;;  %v1028_v12 = vadd.f32 %v1024_v9, %v1004_v5  ;;  %v1029_v13 = vadd.f32 %v1025_v10, %v1006_v6  ;;  %v1026_v14 = vld [vmem:[#allocation2 + $0x8] sm:$0xff] }
 0x248   : > { %v1030_v15 = vadd.f32 %v1026_v14, %v1008_v7 }
 0x249   : > { %1031 = vst [vmem:[#allocation2 + $0x10] sm:$0xff] %v1027_v11  ;;  %1032 = vst [vmem:[#allocation2] sm:$0xff] %v1028_v12 }
 0x24a   : > { %1033 = vst [vmem:[#allocation2 + $0x18] sm:$0xff] %v1029_v13  ;;  %1034 = vst [vmem:[#allocation2 + $0x8] sm:$0xff] %v1030_v15 }
 0x24b PF: > { %p1284_p2 = scmp.ne.s32.totalorder %s1700_s15, 2 }
 0x24d   : > { %1038 = sbr.rel (%p1284_p2) target bundleno = 599 (0x257), region = 56 }
 0x252   : > { %v1039_v16 = vld [vmem:[#allocation2 + $0x10] sm:$0xff]  ;;  %v1040_v17 = vld [vmem:[#allocation2] sm:$0xff]  ;;  %v1041_v18 = vld [vmem:[#allocation2 + $0x18] sm:$0xff] }
 0x253   : > { %v1294_v19 = vpack.c.bf16 %v1040_v17, %v1039_v16  ;;  %v1042_v20 = vld [vmem:[#allocation2 + $0x8] sm:$0xff] }
 0x254   : > { %v1295_v21 = vpack.c.bf16 %v1042_v20, %v1041_v18 }
 0x255   : > { %1055 = vst [vmem:[#allocation9] sm:$0xff] %v1294_v19 }
 0x256   : > { %1056 = vst [vmem:[#allocation9 + $0x8] sm:$0xff] %v1295_v21 }
 0x257 PF: > { %p1322_p5 = scmp.eq.s32.totalorder %s1807_s20, 2  ;;  %s1718_s23 = smov [#allocation9]  }
 0x258   : > { %s1067_s6 = sshll.u32 %s1718_s23, 4  ;;  %s1068_s6 = int_to_ptr.vmem [resolvable:$true] %s1067_s6 }
 0x259   : > { %s1626_s8 = scalar_lea.vmem %s1068_s6, 256  ;;  %p1633_p11 = scmp.lt.s32.totalorder %s1068_s6, %s1068_s6 }
 0x25a   : > { %p1627_p8 = scmp.ne.s32.totalorder %s1068_s6, %s1626_s8  ;;  %p1634_p12 = scmp.lt.s32.totalorder %s1626_s8, %s1626_s8 }
 0x25c   : > { %p1628_p10 = pnand %p1627_p8, %p1322_p5  ;;  %p1635_p13 = por %p1634_p12, %p1633_p11 }
 0x25e   : > { %p1629_p9 = pneg %p1628_p10 }
 0x260   : > { %p1636_p0 = pnand %p1635_p13, %p1629_p9 }
 0x262   : > { %1639 = shalt.err (!%p1636_p0)
}
 0x263   : > { %s1719_s15 = smov 128   ;;  %s1720_s9 = smov 8  }
 0x264   : > { %1305 = dma.vmem_to_hbm [thread:$0]  (%p1322_p5), %s1068_s6, 256, %s2012_s3, [#allocation5], %s1719_s15, %s1719_s15, %s1720_s9  }
 0x265   : > { %1683 = dma.done.wait (%p1322_p5), [#allocation5], 256  }
 0x266   : > { %1685 = vsyncadd (%p1322_p5), [#allocation5], 4294967040 }
 0x267 PF: > { %s18_s17 = sadd.s32 1, %s1708_s17   ;;  %s2017_s12 = smov %s1692_s13 }
 0x268   : > { %p15_p1 = scmp.ge.s32.totalorder %s18_s17, 5   ;;  %s2018_s13 = smov %s1696_s14 }
 0x269   : > { %s2019_s14 = smov %s1785_s24  ;;  %s2020_s15 = smov %s1704_s16 }
 0x26a   : > { %s2021_s16 = smov %s2023_s18  ;;  %17 = sbr.rel (!%p15_p1) target bundleno = 6 (0x6), region = 99 }
 0x26f   :  { %1083 = vsyncpa [#allocation4], 1 }
 0x270   :  { %1085 = vsyncpa [#allocation4 + $0x1], 1 }
 0x271   :  { %1086 = vsyncpa [#allocation7], 1 }
 0x272   :  { %1088 = vsyncpa [#allocation7 + $0x1], 1 }
 0x273   :  { %1089 = vsyncpa [#allocation5], 1 }
 0x274   :  { %1091 = vsyncpa [#allocation5 + $0x1], 1 }

</bundles_post_ra>
